<compile_context>
chip_gen: v5e
topology: v5e:2x2
jax: 0.10.0
libtpu: 0.0.40
codegen_flags: <defaults>
</compile_context>

<pallas_src>
import functools

import jax
import jax.numpy as jnp
from jax.experimental import pallas as pl
from jax.experimental.pallas import tpu as pltpu

_LANE = 128  # lane grain (last dim)


def _round_up(n, m):
    return ((n + m - 1) // m) * m


# ----------------------------------------------------------------------------
# Kernel: the entire MLP hot path (3 matmuls + biases + 2 ReLUs), all operands
# VMEM-resident, single tile (no grid).
# ----------------------------------------------------------------------------
def _dense_net_kernel(x_ref, w1_ref, w23_ref, b_ref, o_ref):
    # x:   [B, D]      f32  (unpadded batch; D = 1024 is already lane-aligned)
    # w1:  [D, P]      bf16
    # w23: [2, P, P]   bf16  (w23[0] = layer-2 weights, w23[1] = layer-3 weights)
    # b:   [3, P]      f32   (rows: b1, b2, b3)
    # o:   [B, P]      f32
    x = x_ref[...].astype(jnp.bfloat16)

    h1 = jnp.dot(x, w1_ref[...], preferred_element_type=jnp.float32)
    h1 = jnp.maximum(h1 + b_ref[0:1, :], 0.0).astype(jnp.bfloat16)

    h2 = jnp.dot(h1, w23_ref[0], preferred_element_type=jnp.float32)
    h2 = jnp.maximum(h2 + b_ref[1:2, :], 0.0).astype(jnp.bfloat16)

    out = jnp.dot(h2, w23_ref[1], preferred_element_type=jnp.float32)
    o_ref[...] = (out + b_ref[2:3, :]).astype(o_ref.dtype)


# ----------------------------------------------------------------------------
# Parameter init (torch.nn.Linear default init, unpadded f32 "reference"
# params) and one-time prep into padded/stacked bf16 kernel params.
# ----------------------------------------------------------------------------
def init_params(key, input_size, hidden1, hidden2, output_size):
    """Uniform(-1/sqrt(fan_in), 1/sqrt(fan_in)) init for weights and biases,
    stored as [in_features, out_features] so the kernel computes x @ W + b."""
    ks = jax.random.split(key, 6)

    def linear(kw, kb, fan_in, fan_out):
        bound = 1.0 / jnp.sqrt(jnp.float32(fan_in))
        w = jax.random.uniform(kw, (fan_in, fan_out), jnp.float32, -bound, bound)
        b = jax.random.uniform(kb, (fan_out,), jnp.float32, -bound, bound)
        return w, b

    w1, b1 = linear(ks[0], ks[1], input_size, hidden1)
    w2, b2 = linear(ks[2], ks[3], hidden1, hidden2)
    w3, b3 = linear(ks[4], ks[5], hidden2, output_size)
    return {"w1": w1, "b1": b1, "w2": w2, "b2": b2, "w3": w3, "b3": b3}


def prepare_params(params):
    """Pad all hidden/output dims to a common 128-lane grain P, cast weights
    to bf16 once, and collapse the small operands: w2/w3 -> one [2, P, P]
    stack, b1/b2/b3 -> one [3, P] array (4 DMAs total instead of 7).

    Zero padding keeps the valid output columns exact: padded bias = 0,
    ReLU(0) = 0, and padded weight rows only multiply zeros."""
    w1, b1 = params["w1"], params["b1"]
    w2, b2 = params["w2"], params["b2"]
    w3, b3 = params["w3"], params["b3"]

    D = w1.shape[0]
    P = max(_round_up(w1.shape[1], _LANE),
            _round_up(w2.shape[1], _LANE),
            _round_up(w3.shape[1], _LANE))

    w1p = jnp.zeros((D, P), jnp.bfloat16)
    w1p = w1p.at[:, :w1.shape[1]].set(w1.astype(jnp.bfloat16))

    w2p = jnp.zeros((P, P), jnp.bfloat16)
    w2p = w2p.at[:w2.shape[0], :w2.shape[1]].set(w2.astype(jnp.bfloat16))
    w3p = jnp.zeros((P, P), jnp.bfloat16)
    w3p = w3p.at[:w3.shape[0], :w3.shape[1]].set(w3.astype(jnp.bfloat16))
    w23 = jnp.stack([w2p, w3p], axis=0)

    b = jnp.zeros((3, P), jnp.float32)
    b = b.at[0, :b1.shape[0]].set(b1)
    b = b.at[1, :b2.shape[0]].set(b2)
    b = b.at[2, :b3.shape[0]].set(b3)

    return {"w1": w1p, "w23": w23, "b": b}


# ----------------------------------------------------------------------------
# Forward wrapper
# ----------------------------------------------------------------------------
@functools.partial(jax.jit, static_argnames=("out_size",))
def dense_net_forward(x_nchw, padded_params, out_size):
    """Forward pass matching the PyTorch DenseNet module.

    x_nchw:        [B, C, H, W] float32
    padded_params: output of prepare_params
    out_size:      true number of output classes (output is sliced to it)
    returns:       [B, out_size] float32
    """
    B = x_nchw.shape[0]
    x_flat = x_nchw.reshape(B, -1)            # nn.Flatten (row-major = torch)

    w1 = padded_params["w1"]
    w23 = padded_params["w23"]
    b = padded_params["b"]
    D, P = w1.shape
    assert x_flat.shape[1] == D, "flattened input size mismatch"

    flops = 2 * (B * D * P + 2 * B * P * P)
    bytes_accessed = (x_flat.size * 4 + w1.size * 2 + w23.size * 2
                      + b.size * 4 + B * P * 4)
    cost = pl.CostEstimate(flops=flops, transcendentals=0,
                           bytes_accessed=bytes_accessed)

    vmem_spec = pl.BlockSpec(memory_space=pltpu.MemorySpace.VMEM)

    out = pl.pallas_call(
        _dense_net_kernel,
        out_shape=jax.ShapeDtypeStruct((B, P), jnp.float32),
        in_specs=[vmem_spec] * 4,
        out_specs=vmem_spec,
        cost_estimate=cost,
    )(x_flat, w1, w23, b)

    # Only the class columns need slicing; batch rows were never padded.
    return out[:, :out_size]


def _reference_forward(x_nchw, params):
    x = x_nchw.reshape(x_nchw.shape[0], -1)
    h1 = jnp.maximum(x @ params["w1"] + params["b1"], 0.0)
    h2 = jnp.maximum(h1 @ params["w2"] + params["b2"], 0.0)
    return h2 @ params["w3"] + params["b3"]


if __name__ == "__main__":
    key = jax.random.PRNGKey(0)
    k_x, k_p = jax.random.split(key)

    # Small shapes consistent with the module: NCHW image input flattened.
    B, C, H, W = 2, 4, 16, 16
    input_size = C * H * W          # 1024
    hidden1, hidden2 = 32, 32       # stand-ins for the Optuna-tuned sizes
    output_size = 10

    x = jax.random.normal(k_x, (B, C, H, W), dtype=jnp.float32)
    params = init_params(k_p, input_size, hidden1, hidden2, output_size)
    padded_params = prepare_params(params)

    out = dense_net_forward(x, padded_params, output_size)
    out = jax.block_until_ready(out)

    # Correctness check against a pure-JAX f32 reference (bf16 inputs/weights
    # with f32 accumulation -> slightly relaxed tolerance).
    ref = _reference_forward(x, params)
    assert out.shape == (B, output_size)
    assert jnp.allclose(out, ref, atol=2e-2, rtol=2e-2), "mismatch vs reference"

    print("KERNEL_OK")
</pallas_src>

<mosaic_0001>
module attributes {stable_mosaic.version = 11 : i64} {
  func.func @_dense_net_kernel(%arg0: memref<2x1024xf32, #tpu.memory_space<vmem>>, %arg1: memref<1024x128xbf16, #tpu.memory_space<vmem>>, %arg2: memref<2x128x128xbf16, #tpu.memory_space<vmem>>, %arg3: memref<3x128xf32, #tpu.memory_space<vmem>>, %arg4: memref<2x128xf32, #tpu.memory_space<vmem>>) attributes {dimension_semantics = [], scalar_prefetch = 0 : i64, scratch_operands = 0 : i64, tpu.core_type = #tpu.core_type<tc>} {
    %c0 = arith.constant 0 : index
    %c0_0 = arith.constant 0 : index
    %0 = vector.load %arg0[%c0, %c0_0] : memref<2x1024xf32, #tpu.memory_space<vmem>>, vector<2x1024xf32>
    %1 = arith.truncf %0 : vector<2x1024xf32> to vector<2x1024xbf16>
    %c0_1 = arith.constant 0 : index
    %c0_2 = arith.constant 0 : index
    %2 = vector.load %arg1[%c0_1, %c0_2] : memref<1024x128xbf16, #tpu.memory_space<vmem>>, vector<1024x128xbf16>
    %cst = arith.constant dense<0.000000e+00> : vector<2x128xf32>
    %3 = tpu.matmul %1, %2, %cst {dimension_numbers = #tpu.dot_dimension_numbers<[1], [0], [0], [1], [0, 0, 1, 1], [], []>} : vector<2x1024xbf16>, vector<1024x128xbf16>, vector<2x128xf32> -> vector<2x128xf32>
    %c0_3 = arith.constant 0 : index
    %c0_4 = arith.constant 0 : index
    %4 = vector.load %arg3[%c0_3, %c0_4] : memref<3x128xf32, #tpu.memory_space<vmem>>, vector<1x128xf32>
    %5 = vector.broadcast %4 : vector<1x128xf32> to vector<2x128xf32>
    %6 = arith.addf %3, %5 : vector<2x128xf32>
    %cst_5 = arith.constant 0.000000e+00 : f32
    %7 = vector.broadcast %cst_5 : f32 to vector<2x128xf32>
    %8 = arith.maximumf %6, %7 : vector<2x128xf32>
    %9 = arith.truncf %8 : vector<2x128xf32> to vector<2x128xbf16>
    %c0_6 = arith.constant 0 : index
    %c0_7 = arith.constant 0 : index
    %c0_8 = arith.constant 0 : index
    %10 = vector.load %arg2[%c0_6, %c0_7, %c0_8] : memref<2x128x128xbf16, #tpu.memory_space<vmem>>, vector<1x128x128xbf16>
    %11 = vector.shape_cast %10 : vector<1x128x128xbf16> to vector<128x128xbf16>
    %cst_9 = arith.constant dense<0.000000e+00> : vector<2x128xf32>
    %12 = tpu.matmul %9, %11, %cst_9 {dimension_numbers = #tpu.dot_dimension_numbers<[1], [0], [0], [1], [0, 0, 1, 1], [], []>} : vector<2x128xbf16>, vector<128x128xbf16>, vector<2x128xf32> -> vector<2x128xf32>
    %c1 = arith.constant 1 : index
    %c0_10 = arith.constant 0 : index
    %13 = vector.load %arg3[%c1, %c0_10] : memref<3x128xf32, #tpu.memory_space<vmem>>, vector<1x128xf32>
    %14 = vector.broadcast %13 : vector<1x128xf32> to vector<2x128xf32>
    %15 = arith.addf %12, %14 : vector<2x128xf32>
    %cst_11 = arith.constant 0.000000e+00 : f32
    %16 = vector.broadcast %cst_11 : f32 to vector<2x128xf32>
    %17 = arith.maximumf %15, %16 : vector<2x128xf32>
    %18 = arith.truncf %17 : vector<2x128xf32> to vector<2x128xbf16>
    %c1_12 = arith.constant 1 : index
    %c0_13 = arith.constant 0 : index
    %c0_14 = arith.constant 0 : index
    %19 = vector.load %arg2[%c1_12, %c0_13, %c0_14] : memref<2x128x128xbf16, #tpu.memory_space<vmem>>, vector<1x128x128xbf16>
    %20 = vector.shape_cast %19 : vector<1x128x128xbf16> to vector<128x128xbf16>
    %cst_15 = arith.constant dense<0.000000e+00> : vector<2x128xf32>
    %21 = tpu.matmul %18, %20, %cst_15 {dimension_numbers = #tpu.dot_dimension_numbers<[1], [0], [0], [1], [0, 0, 1, 1], [], []>} : vector<2x128xbf16>, vector<128x128xbf16>, vector<2x128xf32> -> vector<2x128xf32>
    %c2 = arith.constant 2 : index
    %c0_16 = arith.constant 0 : index
    %22 = vector.load %arg3[%c2, %c0_16] : memref<3x128xf32, #tpu.memory_space<vmem>>, vector<1x128xf32>
    %23 = vector.broadcast %22 : vector<1x128xf32> to vector<2x128xf32>
    %24 = arith.addf %21, %23 : vector<2x128xf32>
    %c0_17 = arith.constant 0 : index
    %c0_18 = arith.constant 0 : index
    %25 = vector.load %arg4[%c0_17, %c0_18] : memref<2x128xf32, #tpu.memory_space<vmem>>, vector<2x128xf32>
    tpu.vector_store %arg4[%c0_17, %c0_18], %24 {strides = array<i32>} : memref<2x128xf32, #tpu.memory_space<vmem>>, vector<2x128xf32>,
    return
  }
}

</mosaic_0001>

<bundles_post_ra>
// kernel: dense_net_forward.1
= control target key start
LH: loop header
LB: loop body
LE: loop exit
PB: predicated region body
PF: predicated region fallthrough
CT: control target
= control target key end

     0   :  { %9 = vsyncpa [#allocation3], 0  ;;  %s1437_s0 = inlined_call_operand.vmem [shape: f32[2,1024], index: 0, kind: input, shape index: {}]   ;;  %s1438_s1 = inlined_call_operand.hbm [shape: bf16[1024,128], index: 1, kind: input, shape index: {}]   ;;  %s1439_s2 = inlined_call_operand.vmem [shape: bf16[2,128,128], index: 2, kind: input, shape index: {}]   ;;  %s1440_s3 = inlined_call_operand.vmem [shape: f32[3,128], index: 3, kind: input, shape index: {}]   ;;  %s1441_s4 = inlined_call_operand.hbm [shape: f32[2,128], index: 4, kind: output, shape index: {}]  }
   0x1   :  { %10 = vsyncpa [#allocation4], 0  ;;  %s17_s17 = sshll.u32 %s1438_s1, 4  ;;  %s1339_s18 = smov [#allocation2]   ;;  %s18_s17 = int_to_ptr.hbm [resolvable:$true] %s17_s17 }
   0x2   :  { %s19_s19 = sshll.u32 %s1339_s18, 4  ;;  %s1340_s20 = smov 64   ;;  %s20_s19 = int_to_ptr.vmem [resolvable:$true] %s19_s19 }
   0x3   :  { %s1341_s21 = smov 4  }
   0x4   :  { %25 = dma.hbm_to_vmem [thread:$0]  %s18_s17, 8192, %s20_s19, [#allocation3], %s1340_s20, %s1340_s20, %s1341_s21  }
   0x5   :  { %1335 = dma.done.wait [#allocation3], 8192  }
   0x6   :  { %1336 = vsyncadd [#allocation3], 4294959104  ;;  %v1207_v0 = vld [vmem:[#allocation2 + $0x38] sm:$0xff]  ;;  %v1206_v4 = vld [vmem:[#allocation2 + $0x30] sm:$0xff]  ;;  %s1342_s8 = smov [#allocation5]  }
   0x7   :  { %v1215_v1 = vld [vmem:[#allocation2 + $0x78] sm:$0xff]  ;;  %579 = vmatpush.bf16.msra.mxu0 %v1207_v0  ;;  %v1214_v5 = vld [vmem:[#allocation2 + $0x70] sm:$0xff]  ;;  %v1205_v8 = vld [vmem:[#allocation2 + $0x28] sm:$0xff]  ;;  %s852_s9 = sshll.u32 %s1342_s8, 4  ;;  %s853_s9 = int_to_ptr.vmem [resolvable:$true] %s852_s9 }
   0x8   :  { %v1223_v2 = vld [vmem:[#allocation2 + $0xb8] sm:$0xff]  ;;  %592 = vmatpush.bf16.msra.mxu1 %v1215_v1  ;;  %v1222_v6 = vld [vmem:[#allocation2 + $0xb0] sm:$0xff]  ;;  %v1213_v9 = vld [vmem:[#allocation2 + $0x68] sm:$0xff] }
   0x9   :  { %v1231_v3 = vld [vmem:[#allocation2 + $0xf8] sm:$0xff]  ;;  %605 = vmatpush.bf16.msra.mxu2 %v1223_v2  ;;  %v1230_v7 = vld [vmem:[#allocation2 + $0xf0] sm:$0xff]  ;;  %v1221_v10 = vld [vmem:[#allocation2 + $0xa8] sm:$0xff] }
   0xa   :  { %618 = vmatpush.bf16.msra.mxu3 %v1231_v3  ;;  %v1229_v11 = vld [vmem:[#allocation2 + $0xe8] sm:$0xff]  ;;  %v1204_v12 = vld [vmem:[#allocation2 + $0x20] sm:$0xff]  ;;  %v34_v16 = vld [vmem:[%s1437_s0] sm:$0xff] }
   0xb   :  { %580 = vmatpush.bf16.msra.mxu0 %v1206_v4  ;;  %v1212_v13 = vld [vmem:[#allocation2 + $0x60] sm:$0xff]  ;;  %v1203_v17 = vld [vmem:[#allocation2 + $0x18] sm:$0xff]  ;;  %38 = vst [vmem:[#allocation1] ss:$4 sm:$0xff] %v34_v16  ;;  %v1202_v21 = vld [vmem:[#allocation2 + $0x10] sm:$0xff] }
   0xc   :  { %593 = vmatpush.bf16.msra.mxu1 %v1214_v5  ;;  %v1220_v14 = vld [vmem:[#allocation2 + $0xa0] sm:$0xff]  ;;  %v1211_v18 = vld [vmem:[#allocation2 + $0x58] sm:$0xff]  ;;  %v1210_v22 = vld [vmem:[#allocation2 + $0x50] sm:$0xff] }
   0xd   :  { %606 = vmatpush.bf16.msra.mxu2 %v1222_v6  ;;  %v1228_v15 = vld [vmem:[#allocation2 + $0xe0] sm:$0xff]  ;;  %v1219_v19 = vld [vmem:[#allocation2 + $0x98] sm:$0xff]  ;;  %v1218_v23 = vld [vmem:[#allocation2 + $0x90] sm:$0xff] }
   0xe   :  { %619 = vmatpush.bf16.msra.mxu3 %v1230_v7  ;;  %v1227_v20 = vld [vmem:[#allocation2 + $0xd8] sm:$0xff]  ;;  %v1226_v24 = vld [vmem:[#allocation2 + $0xd0] sm:$0xff]  ;;  %v1201_v25 = vld [vmem:[#allocation2 + $0x8] sm:$0xff] }
   0xf   :  { %581 = vmatpush.bf16.msra.mxu0 %v1205_v8  ;;  %v1209_v26 = vld [vmem:[#allocation2 + $0x48] sm:$0xff]  ;;  %v35_v29 = vld [vmem:[%s1437_s0 + $0x8] sm:$0xff]  ;;  %v1239_v34 = vld [vmem:[#allocation2 + $0x138] sm:$0xff] }
  0x10   :  { %594 = vmatpush.bf16.msra.mxu1 %v1213_v9  ;;  %v1217_v27 = vld [vmem:[#allocation2 + $0x88] sm:$0xff]  ;;  %v1200_v30 = vld [vmem:[#allocation2] sm:$0xff]  ;;  %40 = vst [vmem:[#allocation1 + $0x20] ss:$4 sm:$0xff] %v35_v29  ;;  %v1247_v35 = vld [vmem:[#allocation2 + $0x178] sm:$0xff] }
  0x11   :  { %607 = vmatpush.bf16.msra.mxu2 %v1221_v10  ;;  %v1225_v28 = vld [vmem:[#allocation2 + $0xc8] sm:$0xff]  ;;  %v1208_v31 = vld [vmem:[#allocation2 + $0x40] sm:$0xff]  ;;  %v1255_v40 = vld [vmem:[#allocation2 + $0x1b8] sm:$0xff] }
  0x12   :  { %620 = vmatpush.bf16.msra.mxu3 %v1229_v11  ;;  %v1216_v32 = vld [vmem:[#allocation2 + $0x80] sm:$0xff]  ;;  %v43_v36 = vld.sshfl [vmem:[#allocation1 + $0x10] sm:$0xff pattern:$0x73625140]  ;;  %v1263_v41 = vld [vmem:[#allocation2 + $0x1f8] sm:$0xff] }
  0x13   :  { %582 = vmatpush.bf16.msra.mxu0 %v1204_v12  ;;  %v1224_v33 = vld [vmem:[#allocation2 + $0xc0] sm:$0xff]  ;;  %v41_v37 = vld.sshfl [vmem:[#allocation1] sm:$0xff pattern:$0x73625140]  ;;  %v59_v42 = vpack.c.bf16 %v43_v36, %v43_v36  ;;  %v1238_v46 = vld [vmem:[#allocation2 + $0x130] sm:$0xff] }
  0x14   :  { %595 = vmatpush.bf16.msra.mxu1 %v1212_v13  ;;  %v44_v38 = vld.sshfl [vmem:[#allocation1 + $0x18] sm:$0xff pattern:$0x73625140]  ;;  %v42_v39 = vld.sshfl [vmem:[#allocation1 + $0x8] sm:$0xff pattern:$0x73625140]  ;;  %v57_v43 = vpack.c.bf16 %v41_v37, %v41_v37 }
  0x15   :  { %608 = vmatpush.bf16.msra.mxu2 %v1220_v14  ;;  %v60_v44 = vpack.c.bf16 %v44_v38, %v44_v38  ;;  %v58_v45 = vpack.c.bf16 %v42_v39, %v42_v39  ;;  %v1246_v47 = vld [vmem:[#allocation2 + $0x170] sm:$0xff]  ;;  %v1237_v50 = vld [vmem:[#allocation2 + $0x128] sm:$0xff]  ;;  %v1236_v54 = vld [vmem:[#allocation2 + $0x120] sm:$0xff] }
  0x16   :  { %621 = vmatpush.bf16.msra.mxu3 %v1228_v15  ;;  %v1254_v48 = vld [vmem:[#allocation2 + $0x1b0] sm:$0xff]  ;;  %v1245_v51 = vld [vmem:[#allocation2 + $0x168] sm:$0xff]  ;;  %v1244_v55 = vld [vmem:[#allocation2 + $0x160] sm:$0xff] }
  0x17   :  { %583 = vmatpush.bf16.msra.mxu0 %v1203_v17  ;;  %v1262_v49 = vld [vmem:[#allocation2 + $0x1f0] sm:$0xff]  ;;  %v1253_v52 = vld [vmem:[#allocation2 + $0x1a8] sm:$0xff]  ;;  %v1252_v56 = vld [vmem:[#allocation2 + $0x1a0] sm:$0xff] }
  0x18   :  { %596 = vmatpush.bf16.msra.mxu1 %v1211_v18  ;;  %v1261_v53 = vld [vmem:[#allocation2 + $0x1e8] sm:$0xff]  ;;  %v1260_v57 = vld [vmem:[#allocation2 + $0x1e0] sm:$0xff]  ;;  %v1235_v58 = vld [vmem:[#allocation2 + $0x118] sm:$0xff] }
  0x19   :  { %609 = vmatpush.bf16.msra.mxu2 %v1219_v19  ;;  %v1243_v59 = vld [vmem:[#allocation2 + $0x158] sm:$0xff]  ;;  %v1234_v62 = vld [vmem:[#allocation2 + $0x110] sm:$0xff]  ;;  %v1233_v2 = vld [vmem:[#allocation2 + $0x108] sm:$0xff] }
  0x1a   :  { %622 = vmatpush.bf16.msra.mxu3 %v1227_v20  ;;  %v1251_v60 = vld [vmem:[#allocation2 + $0x198] sm:$0xff]  ;;  %v1242_v63 = vld [vmem:[#allocation2 + $0x150] sm:$0xff]  ;;  %v1241_v3 = vld [vmem:[#allocation2 + $0x148] sm:$0xff] }
  0x1b   :  { %584 = vmatpush.bf16.msra.mxu0 %v1202_v21  ;;  %v1259_v61 = vld [vmem:[#allocation2 + $0x1d8] sm:$0xff]  ;;  %v1250_v0 = vld [vmem:[#allocation2 + $0x190] sm:$0xff]  ;;  %v1249_v4 = vld [vmem:[#allocation2 + $0x188] sm:$0xff] }
  0x1c   :  { %597 = vmatpush.bf16.msra.mxu1 %v1210_v22  ;;  %v1258_v1 = vld [vmem:[#allocation2 + $0x1d0] sm:$0xff]  ;;  %v1257_v5 = vld [vmem:[#allocation2 + $0x1c8] sm:$0xff]  ;;  %v1232_v6 = vld [vmem:[#allocation2 + $0x100] sm:$0xff] }
  0x1d   :  { %610 = vmatpush.bf16.msra.mxu2 %v1218_v23  ;;  %v1240_v7 = vld [vmem:[#allocation2 + $0x140] sm:$0xff]  ;;  %v45_v10 = vld.sshfl [vmem:[#allocation1 + $0x20] sm:$0xff pattern:$0x73625140]  ;;  %v1271_v18 = vld [vmem:[%s1439_s2 + $0x38] sm:$0xff] }
  0x1e   :  { %623 = vmatpush.bf16.msra.mxu3 %v1226_v24  ;;  %v1248_v8 = vld [vmem:[#allocation2 + $0x180] sm:$0xff]  ;;  %v47_v12 = vld.sshfl [vmem:[#allocation1 + $0x30] sm:$0xff pattern:$0x73625140]  ;;  %v61_v14 = vpack.c.bf16 %v45_v10, %v45_v10  ;;  %v1268_v21 = vld [vmem:[%s1439_s2 + $0x20] sm:$0xff] }
  0x1f   :  { %585 = vmatpush.bf16.msra.mxu0 %v1201_v25  ;;  %v1256_v9 = vld [vmem:[#allocation2 + $0x1c0] sm:$0xff]  ;;  %v48_v13 = vld.sshfl [vmem:[#allocation1 + $0x38] sm:$0xff pattern:$0x73625140]  ;;  %v63_v16 = vpack.c.bf16 %v47_v12, %v47_v12  ;;  %v1270_v19 = vld [vmem:[%s1439_s2 + $0x30] sm:$0xff] }
  0x20   :  { %598 = vmatpush.bf16.msra.mxu1 %v1209_v26  ;;  %v46_v11 = vld.sshfl [vmem:[#allocation1 + $0x28] sm:$0xff pattern:$0x73625140]  ;;  %v64_v17 = vpack.c.bf16 %v48_v13, %v48_v13  ;;  %v1267_v22 = vld [vmem:[%s1439_s2 + $0x18] sm:$0xff]  ;;  %v1266_v24 = vld [vmem:[%s1439_s2 + $0x10] sm:$0xff] }
  0x21   :  { %611 = vmatpush.bf16.msra.mxu2 %v1217_v27  ;;  %v62_v15 = vpack.c.bf16 %v46_v11, %v46_v11  ;;  %v1269_v20 = vld [vmem:[%s1439_s2 + $0x28] sm:$0xff]  ;;  %v1278_v36 = vld [vmem:[%s1439_s2 + $0x70] sm:$0xff] }
  0x22   :  { %624 = vmatpush.bf16.msra.mxu3 %v1225_v28  ;;  %v1265_v26 = vld [vmem:[%s1439_s2 + $0x8] sm:$0xff] }
  0x23   :  { %586 = vmatpush.bf16.msra.mxu0 %v1200_v30  ;;  %v1264_v30 = vld [vmem:[%s1439_s2] sm:$0xff]  ;;  %v1277_v38 = vld [vmem:[%s1439_s2 + $0x68] sm:$0xff] }
  0x24   :  { %599 = vmatpush.bf16.msra.mxu1 %v1208_v31 }
  0x25   :  { %612 = vmatpush.bf16.msra.mxu2 %v1216_v32  ;;  %v1284_v32 = vld [vmem:[%s1440_s3] ss:$0 sm:$0xff] }
  0x26   :  { %625 = vmatpush.bf16.msra.mxu3 %v1224_v33  ;;  %587 = vmatmul.bf16.vlgmr.msra.gmra.mxu0 %v57_v43  ;;  %v1279_v33 = vld [vmem:[%s1439_s2 + $0x78] sm:$0xff] }
  0x27   :  { %631 = vmatpush.bf16.msrb.mxu0 %v1239_v34  ;;  %600 = vmatmul.bf16.vlgmr.msra.gmra.mxu1 %v58_v45 }
  0x28   :  { %644 = vmatpush.bf16.msrb.mxu1 %v1247_v35  ;;  %613 = vmatmul.bf16.vlgmr.msra.gmra.mxu2 %v59_v42  ;;  %v1275_v42 = vld [vmem:[%s1439_s2 + $0x58] sm:$0xff] }
  0x29   :  { %657 = vmatpush.bf16.msrb.mxu2 %v1255_v40  ;;  %626 = vmatmul.bf16.vlgmr.msra.gmra.mxu3 %v60_v44  ;;  %v1276_v40 = vld [vmem:[%s1439_s2 + $0x60] sm:$0xff] }
  0x2a   :  { %670 = vmatpush.bf16.msrb.mxu3 %v1263_v41 }
  0x2b   :  { %632 = vmatpush.bf16.msrb.mxu0 %v1238_v46 }
  0x2c   :  { %645 = vmatpush.bf16.msrb.mxu1 %v1246_v47  ;;  %v1274_v47 = vld [vmem:[%s1439_s2 + $0x50] sm:$0xff] }
  0x2d   :  { %658 = vmatpush.bf16.msrb.mxu2 %v1254_v48 }
  0x2e   :  { %671 = vmatpush.bf16.msrb.mxu3 %v1262_v49 }
  0x2f   :  { %633 = vmatpush.bf16.msrb.mxu0 %v1237_v50 }
  0x30   :  { %646 = vmatpush.bf16.msrb.mxu1 %v1245_v51 }
  0x31   :  { %659 = vmatpush.bf16.msrb.mxu2 %v1253_v52 }
  0x32   :  { %672 = vmatpush.bf16.msrb.mxu3 %v1261_v53 }
  0x33   :  { %634 = vmatpush.bf16.msrb.mxu0 %v1236_v54 }
  0x34   :  { %647 = vmatpush.bf16.msrb.mxu1 %v1244_v55 }
  0x35   :  { %660 = vmatpush.bf16.msrb.mxu2 %v1252_v56 }
  0x36   :  { %673 = vmatpush.bf16.msrb.mxu3 %v1260_v57 }
  0x37   :  { %635 = vmatpush.bf16.msrb.mxu0 %v1235_v58 }
  0x38   :  { %648 = vmatpush.bf16.msrb.mxu1 %v1243_v59  ;;  %v1273_v59 = vld [vmem:[%s1439_s2 + $0x48] sm:$0xff] }
  0x39   :  { %661 = vmatpush.bf16.msrb.mxu2 %v1251_v60  ;;  %v1272_v60 = vld [vmem:[%s1439_s2 + $0x40] sm:$0xff]  ;;  %s854_s2 = sshll.u32 %s1441_s4, 4  ;;  %s855_s2 = int_to_ptr.hbm [resolvable:$true] %s854_s2 }
  0x3a   :  { %674 = vmatpush.bf16.msrb.mxu3 %v1259_v61  ;;  %v1285_v61 = vld [vmem:[%s1440_s3 + $0x1] ss:$0 sm:$0xff] }
  0x3b   :  { %636 = vmatpush.bf16.msrb.mxu0 %v1234_v62 }
  0x3c   :  { %649 = vmatpush.bf16.msrb.mxu1 %v1242_v63 }
  0x3d   :  { %662 = vmatpush.bf16.msrb.mxu2 %v1250_v0 }
  0x3e   :  { %675 = vmatpush.bf16.msrb.mxu3 %v1258_v1 }
  0x3f   :  { %637 = vmatpush.bf16.msrb.mxu0 %v1233_v2 }
  0x40   :  { %650 = vmatpush.bf16.msrb.mxu1 %v1241_v3  ;;  %v1286_v3 = vld [vmem:[%s1440_s3 + $0x2] ss:$0 sm:$0xff] }
  0x41   :  { %663 = vmatpush.bf16.msrb.mxu2 %v1249_v4 }
  0x42   :  { %676 = vmatpush.bf16.msrb.mxu3 %v1257_v5 }
  0x43   :  { %638 = vmatpush.bf16.msrb.mxu0 %v1232_v6 }
  0x44   :  { %651 = vmatpush.bf16.msrb.mxu1 %v1240_v7 }
  0x45   :  { %664 = vmatpush.bf16.msrb.mxu2 %v1248_v8 }
  0x46   :  { %677 = vmatpush.bf16.msrb.mxu3 %v1256_v9  ;;  %639 = vmatmul.bf16.vlgmr.msrb.gmra.mxu0 %v61_v14 }
  0x47   :  { %652 = vmatmul.bf16.vlgmr.msrb.gmra.mxu1 %v62_v15  ;;  %751 = vmatpush.bf16.msra.mxu0 %v1271_v18 }
  0x48   :  { %665 = vmatmul.bf16.vlgmr.msrb.gmra.mxu2 %v63_v16  ;;  %833 = vmatpush.bf16.msra.mxu1 %v1279_v33 }
  0x49   :  { %678 = vmatmul.bf16.vlgmr.msrb.gmra.mxu3 %v64_v17 }
  0x4b   :  { %752 = vmatpush.bf16.msra.mxu0 %v1270_v19 }
  0x4c   :  { %834 = vmatpush.bf16.msra.mxu1 %v1278_v36 }
  0x4f   :  { %753 = vmatpush.bf16.msra.mxu0 %v1269_v20 }
  0x50   :  { %835 = vmatpush.bf16.msra.mxu1 %v1277_v38 }
  0x53   :  { %754 = vmatpush.bf16.msra.mxu0 %v1268_v21 }
  0x54   :  { %836 = vmatpush.bf16.msra.mxu1 %v1276_v40 }
  0x57   :  { %755 = vmatpush.bf16.msra.mxu0 %v1267_v22 }
  0x58   :  { %837 = vmatpush.bf16.msra.mxu1 %v1275_v42 }
  0x5b   :  { %756 = vmatpush.bf16.msra.mxu0 %v1266_v24 }
  0x5c   :  { %838 = vmatpush.bf16.msra.mxu1 %v1274_v47 }
  0x5f   :  { %757 = vmatpush.bf16.msra.mxu0 %v1265_v26 }
  0x60   :  { %839 = vmatpush.bf16.msra.mxu1 %v1273_v59 }
  0x63   :  { %758 = vmatpush.bf16.msra.mxu0 %v1264_v30 }
  0x64   :  { %840 = vmatpush.bf16.msra.mxu1 %v1272_v60 }
  0xa3   :  { %v588_v23 = vpop.f32.mrf.mxu0 }
  0xa4   :  { %v601_v25 = vpop.f32.mrf.mxu1  ;;  %v589_v37 = vadd.f32 %v1284_v32, %v588_v23 }
  0xa6   :  { %v602_v39 = vadd.f32 %v601_v25, %v589_v37 }
  0xab   :  { %v614_v27 = vpop.f32.mrf.mxu2  ;;  %v590_v29 = vpop.f32.mrf.mxu0 }
  0xac   :  { %v627_v28 = vpop.f32.mrf.mxu3  ;;  %v603_v31 = vpop.f32.mrf.mxu1  ;;  %v615_v41 = vadd.f32 %v614_v27, %v602_v39 }
  0xae   :  { %v628_v43 = vadd.f32 %v627_v28, %v615_v41 }
  0xb3   :  { %v616_v34 = vpop.f32.mrf.mxu2 }
  0xb4   :  { %v629_v35 = vpop.f32.mrf.mxu3 }
  0xc3   :  { %v640_v44 = vpop.f32.mrf.mxu0 }
  0xc4   :  { %v653_v45 = vpop.f32.mrf.mxu1  ;;  %v641_v46 = vadd.f32 %v640_v44, %v628_v43 }
  0xc6   :  { %v654_v48 = vadd.f32 %v653_v45, %v641_v46 }
  0xcb   :  { %v666_v49 = vpop.f32.mrf.mxu2  ;;  %v642_v52 = vpop.f32.mrf.mxu0 }
  0xcc   :  { %v679_v50 = vpop.f32.mrf.mxu3  ;;  %v667_v51 = vadd.f32 %v666_v49, %v654_v48  ;;  %v655_v53 = vpop.f32.mrf.mxu1 }
  0xce   :  { %v680_v54 = vadd.f32 %v679_v50, %v667_v51 }
  0xd0   :  { %v683_v55 = vmax.f32 %v680_v54, 0.0 }
  0xd2   :  { %v684_v56 = vpack.c.bf16 %v683_v55, %v683_v55 }
  0xd3   :  { %v668_v57 = vpop.f32.mrf.mxu2 }
  0xd4   :  { %v681_v58 = vpop.f32.mrf.mxu3  ;;  %759 = vmatmul.bf16.vlgmr.msra.gmra.mxu0 %v684_v56 }
 0x151   :  { %v760_v62 = vpop.f32.mrf.mxu0 }
 0x152   :  { %v761_v63 = vadd.f32 %v1285_v61, %v760_v62 }
 0x154   :  { %v764_v0 = vmax.f32 %v761_v63, 0.0 }
 0x156   :  { %v765_v1 = vpack.c.bf16 %v764_v0, %v764_v0 }
 0x158   :  { %841 = vmatmul.bf16.vlgmr.msra.gmra.mxu1 %v765_v1 }
 0x159   :  { %v762_v2 = vpop.f32.mrf.mxu0 }
 0x1d5   :  { %v842_v4 = vpop.f32.mrf.mxu1 }
 0x1d6   :  { %v843_v5 = vadd.f32 %v1286_v3, %v842_v4 }
 0x1d8   :  { %846 = vst [vmem:[#allocation5] sm:$0x3] %v843_v5 }
 0x1d9   :  { %857 = dma.vmem_to_hbm [thread:$0]  %s853_s9, 32, %s855_s2, [#allocation4]  }
 0x1dd   :  { %v844_v6 = vpop.f32.mrf.mxu1 }
 0x1de   :  { %1337 = dma.done.wait [#allocation4], 32  }
 0x1df   :  { %1338 = vsyncadd [#allocation4], 4294967264 }
 0x1e0   :  { %862 = vsyncpa [#allocation3], 1 }
 0x1e1   :  { %863 = vsyncpa [#allocation4], 1 }

</bundles_post_ra>
